<compile_context>
chip_gen: v7x
topology: tpu7x:2x2x1
jax: 0.10.0
libtpu: 0.0.40
codegen_flags: <defaults>
</compile_context>

<pallas_src>
import functools
from typing import Dict, NamedTuple

import jax
import jax.numpy as jnp
from jax.experimental import pallas as pl
from jax.experimental.pallas import tpu as pltpu


class ShapeSpec(NamedTuple):
    channels: int
    stride: int


# ~32K output pixels per grid step: amortizes the ~0.35us/step overhead while
# keeping double-buffered blocks (~12 MiB) comfortably inside v7x's 64 MiB VMEM.
_TARGET_PIXELS = 32768


def _round_up(a: int, b: int) -> int:
    return (a + b - 1) // b * b


# ---------------------------------------------------------------------------
# Pallas kernel: fused 3x3 / stride-2 / pad-1 conv + bias + ReLU
# ---------------------------------------------------------------------------
def _stem_kernel(x_ref, w_ref, b_ref, o_ref):
    """One (batch, row-tile) grid step: one fused MXU dot + bias + ReLU.

    x_ref : (1, tr*Q, 64*Cin)  bf16  4x4-patch, quad-of-4-output-columns rows
    w_ref : (64*Cin, 4*Cout)   bf16  block-diagonal (per quad pixel) weights
    b_ref : (1, 4*Cout)        f32   bias tiled over the 4 quad pixels
    o_ref : (1, tr*Q, 4*Cout)  bf16  row-major (oh, ow, c) output rows
    """
    acc = jnp.dot(x_ref[0], w_ref[...], preferred_element_type=jnp.float32)
    o_ref[0] = jnp.maximum(acc + b_ref[...], 0.0).astype(o_ref.dtype)


def _pack_weight(w, cin, cout):
    """(Cout, Cin, 3, 3) conv weight -> (16*Cin, Cout) 4x4-patch weight.

    Patch-channel layout: t = dh*2+dw (super-pixel shift), then (ph, pw, c)
    within the 2x2 super-pixel, i.e. kh = 2*dh+ph, kw = 2*dw+pw.  Taps with
    kh > 2 or kw > 2 (the 4x4 patch positions outside the 3x3 window) are zero.
    """
    kc = 4 * cin
    wm = jnp.zeros((4 * kc, cout), jnp.float32)
    for dh in range(2):
        for dw in range(2):
            t = dh * 2 + dw
            for ph in range(2):
                for pw in range(2):
                    kh, kw = 2 * dh + ph, 2 * dw + pw
                    if kh < 3 and kw < 3:
                        row = t * kc + ph * 2 * cin + pw * cin
                        wm = wm.at[row:row + cin, :].set(w[:, :, kh, kw].T)
    return wm


def _choose_row_tile(oh, owp, batch):
    """Row tile: multiple of 8, divides round_up(oh, 8), ~_TARGET_PIXELS/step."""
    oh8 = _round_up(oh, 8)
    cap = max(8, min(oh8, (_TARGET_PIXELS // max(owp, 1)) // 8 * 8))
    tr = 8
    for cand in range(cap, 7, -8):
        if oh8 % cand == 0:
            tr = cand
            break
    # v7x megacore: keep >= 2 grid steps when batch == 1 so both TCs get work.
    if batch == 1 and oh8 // tr < 2 and oh8 >= 16:
        for cand in range(min(cap, oh8 // 2) // 8 * 8, 7, -8):
            if oh8 % cand == 0:
                tr = cand
                break
    return tr


@functools.partial(jax.jit, static_argnames=("out_dtype",))
def _stem_forward(x, wbd, bias_row, *, out_dtype):
    """x: (B, Cin, H, W) f32 -> (B, Cout, OH, OW) out_dtype (conv+bias+ReLU)."""
    B, Cin, H, W = x.shape
    Cout = bias_row.shape[-1] // 4
    OH = (H - 1) // 2 + 1            # matches nn.Conv2d(k=3, s=2, p=1)
    OW = (W - 1) // 2 + 1
    OWp = _round_up(OW, 4)           # 4 output columns per matmul row ("quad")
    Q = OWp // 4
    tr = _choose_row_tile(OH, OWp, B)
    OHp = _round_up(OH, tr)
    R = OHp // tr
    Hp = 2 * OHp + 2
    Wp = 2 * OWp + 2
    K = 16 * Cin                     # per-pixel 4x4-patch channels
    KQ = 4 * K                       # per-quad contraction depth (256 @ Cin=4)
    NQ = 4 * Cout                    # per-quad output lanes   (128 @ Cout=32)

    # ---- glue: NCHW f32 -> padded NHWC bf16 -> 4x4-patch quad slab ----------
    x_nhwc = jnp.transpose(x, (0, 2, 3, 1)).astype(jnp.bfloat16)
    x_pad = jnp.pad(x_nhwc, ((0, 0), (1, Hp - H - 1), (1, Wp - W - 1), (0, 0)))
    sp = x_pad.reshape(B, OHp + 1, 2, OWp + 1, 2, Cin)
    sp = jnp.transpose(sp, (0, 1, 3, 2, 4, 5)).reshape(B, OHp + 1, OWp + 1, 4 * Cin)
    # 4x4 patch per output pixel = the 4 shifted 2x2 super-pixels, concatenated.
    patch = jnp.concatenate(
        [sp[:, :OHp, :OWp], sp[:, :OHp, 1:], sp[:, 1:, :OWp], sp[:, 1:, 1:]],
        axis=-1)                                         # (B, OHp, OWp, 16*Cin)
    lhs = patch.reshape(B, OHp * Q, KQ)                  # lane-dense quad rows

    # ---- explicit VMEM budget: 2x double-buffered blocks + weight/bias ------
    lhs_blk = tr * Q * KQ * 2
    out_blk = tr * Q * NQ * 2
    vmem_limit = int(2 * (lhs_blk + out_blk) + 2 * (KQ * NQ * 2 + NQ * 4)
                     + (4 << 20))

    out = pl.pallas_call(
        _stem_kernel,
        out_shape=jax.ShapeDtypeStruct((B, OHp * Q, NQ), jnp.bfloat16),
        grid_spec=pltpu.PrefetchScalarGridSpec(
            num_scalar_prefetch=0,
            grid=(B, R),
            in_specs=[
                # row-tiled input blocks (O(tr) VMEM, auto double-buffered)
                pl.BlockSpec((1, tr * Q, KQ), lambda b, r: (b, r, 0)),
                # small weight/bias stay resident (block index never changes)
                pl.BlockSpec((KQ, NQ), lambda b, r: (0, 0)),
                pl.BlockSpec((1, NQ), lambda b, r: (0, 0)),
            ],
            out_specs=pl.BlockSpec((1, tr * Q, NQ), lambda b, r: (b, r, 0)),
        ),
        compiler_params=pltpu.CompilerParams(
            dimension_semantics=("parallel", "parallel"),
            vmem_limit_bytes=vmem_limit),
    )(lhs, wbd, bias_row)

    # ---- glue: lane-dense rows -> crop -> the one required NCHW transpose ---
    out = out.reshape(B, OHp, OWp, Cout)[:, :OH, :OW, :]
    return jnp.transpose(out, (0, 3, 1, 2)).astype(out_dtype)


# ---------------------------------------------------------------------------
# Concrete Backbone (forward contract: x[NCHW] -> Dict[str, Tensor[NCHW]])
# ---------------------------------------------------------------------------
class PallasStemBackbone:
    """Minimal concrete backbone: 3x3 s2 p1 conv + ReLU -> {"res2": feat}."""

    def __init__(self, in_channels=4, out_channels=32, key=None,
                 out_dtype=jnp.float32):
        if key is None:
            key = jax.random.PRNGKey(0)
        kw, kb = jax.random.split(key)
        self.ksize = 3
        self.stride = 2
        self.in_channels = in_channels
        self.out_channels = out_channels
        self.out_dtype = out_dtype
        fan_in = in_channels * self.ksize * self.ksize
        bound = 1.0 / (fan_in ** 0.5)
        # PyTorch Conv2d weight layout: (Cout, Cin, KH, KW)
        self.weight = jax.random.uniform(
            kw, (out_channels, in_channels, self.ksize, self.ksize),
            minval=-bound, maxval=bound, dtype=jnp.float32)
        self.bias = jax.random.uniform(
            kb, (out_channels,), minval=-bound, maxval=bound, dtype=jnp.float32)
        # block-diagonal bf16 weight: one (64*Cin, 4*Cout) slab so the 4 output
        # columns of a quad are produced by a single fused MXU dot.
        w64 = _pack_weight(self.weight, in_channels, out_channels)
        self._wbd = jnp.kron(jnp.eye(4, dtype=w64.dtype), w64).astype(jnp.bfloat16)
        self._bias_row = jnp.tile(self.bias, 4)[None, :]      # (1, 4*Cout) f32
        # Base-class bookkeeping.
        self._out_features = ["res2"]
        self._out_feature_channels = {"res2": out_channels}
        self._out_feature_strides = {"res2": self.stride}

    @property
    def padding_constraints(self):
        return {"size_divisiblity": 0, "square_size": 0}

    def output_shape(self) -> Dict[str, ShapeSpec]:
        return {
            name: ShapeSpec(channels=self._out_feature_channels[name],
                            stride=self._out_feature_strides[name])
            for name in self._out_features
        }

    def freeze(self, freeze_at: int = -1):
        raise NotImplementedError

    def forward(self, x: jnp.ndarray) -> Dict[str, jnp.ndarray]:
        """x: (B, Cin, H, W) float32 -> {"res2": (B, Cout, OH, OW)}."""
        assert x.shape[1] == self.in_channels
        feat = _stem_forward(x, self._wbd, self._bias_row,
                             out_dtype=self.out_dtype)
        return {"res2": feat}

    __call__ = forward


# ---------------------------------------------------------------------------
if __name__ == "__main__":
    key = jax.random.PRNGKey(0)
    k_in, k_params = jax.random.split(key)

    B, Cin, H, W = 2, 4, 16, 16
    x = jax.random.normal(k_in, (B, Cin, H, W), dtype=jnp.float32)

    backbone = PallasStemBackbone(in_channels=Cin, out_channels=32, key=k_params)
    feats = backbone(x)
    res2 = jax.block_until_ready(feats["res2"])

    # Reference: same bf16 quantization of inputs/weights, f32 accumulation,
    # computed with the XLA conv (same semantics as nn.Conv2d(3, s=2, p=1)+ReLU).
    xq = x.astype(jnp.bfloat16).astype(jnp.float32)
    wq = backbone.weight.astype(jnp.bfloat16).astype(jnp.float32)
    ref = jax.lax.conv_general_dilated(
        xq, wq, window_strides=(2, 2), padding=((1, 1), (1, 1)),
        dimension_numbers=("NCHW", "OIHW", "NCHW"))
    ref = jnp.maximum(ref + backbone.bias[None, :, None, None], 0.0)

    assert res2.shape == (B, 32, H // 2, W // 2), res2.shape
    assert backbone.output_shape()["res2"] == ShapeSpec(channels=32, stride=2)
    # kernel writes bf16 (feedback #4): allow bf16 output-rounding error
    err = float(jnp.max(jnp.abs(res2 - ref)))
    assert err < 3e-2, f"max abs err {err}"

    print("KERNEL_OK")
</pallas_src>

<mosaic_0001>
module attributes {stable_mosaic.version = 11 : i64} {
  func.func @_stem_kernel(%arg0: i32, %arg1: i32, %arg2: memref<1x16x256xbf16, #tpu.memory_space<vmem>>, %arg3: memref<256x128xbf16, #tpu.memory_space<vmem>>, %arg4: memref<1x128xf32, #tpu.memory_space<vmem>>, %arg5: memref<1x16x128xbf16, #tpu.memory_space<vmem>>) attributes {dimension_semantics = [#tpu.dimension_semantics<parallel>, #tpu.dimension_semantics<parallel>], iteration_bounds = array<i64: 2, 1>, scalar_prefetch = 0 : i64, scratch_operands = 0 : i64, tpu.core_type = #tpu.core_type<tc>, window_params = [{transform_indices = @transform_0, window_bounds = array<i64: 1, 16, 256>}, {pipeline_mode = #tpu.pipeline_mode<synchronous>, transform_indices = @transform_1, window_bounds = array<i64: 256, 128>}, {pipeline_mode = #tpu.pipeline_mode<synchronous>, transform_indices = @transform_2, window_bounds = array<i64: 1, 128>}, {transform_indices = @transform_3, window_bounds = array<i64: 1, 16, 128>}]} {
    %c0 = arith.constant 0 : index
    %c0_0 = arith.constant 0 : index
    %c0_1 = arith.constant 0 : index
    %0 = vector.load %arg2[%c0, %c0_0, %c0_1] : memref<1x16x256xbf16, #tpu.memory_space<vmem>>, vector<1x16x256xbf16>
    %1 = vector.shape_cast %0 : vector<1x16x256xbf16> to vector<16x256xbf16>
    %c0_2 = arith.constant 0 : index
    %c0_3 = arith.constant 0 : index
    %2 = vector.load %arg3[%c0_2, %c0_3] : memref<256x128xbf16, #tpu.memory_space<vmem>>, vector<256x128xbf16>
    %cst = arith.constant dense<0.000000e+00> : vector<16x128xf32>
    %3 = tpu.matmul %1, %2, %cst {dimension_numbers = #tpu.dot_dimension_numbers<[1], [0], [0], [1], [0, 0, 1, 1], [], []>} : vector<16x256xbf16>, vector<256x128xbf16>, vector<16x128xf32> -> vector<16x128xf32>
    %c0_4 = arith.constant 0 : index
    %c0_5 = arith.constant 0 : index
    %4 = vector.load %arg4[%c0_4, %c0_5] : memref<1x128xf32, #tpu.memory_space<vmem>>, vector<1x128xf32>
    %5 = vector.broadcast %4 : vector<1x128xf32> to vector<16x128xf32>
    %6 = arith.addf %3, %5 : vector<16x128xf32>
    %cst_6 = arith.constant 0.000000e+00 : f32
    %7 = vector.broadcast %cst_6 : f32 to vector<16x128xf32>
    %8 = arith.maximumf %6, %7 : vector<16x128xf32>
    %9 = arith.truncf %8 : vector<16x128xf32> to vector<16x128xbf16>
    %c0_7 = arith.constant 0 : index
    %c0_8 = arith.constant 0 : index
    %c0_9 = arith.constant 0 : index
    %10 = vector.load %arg5[%c0_7, %c0_8, %c0_9] : memref<1x16x128xbf16, #tpu.memory_space<vmem>>, vector<1x16x128xbf16>
    %11 = vector.shape_cast %10 : vector<1x16x128xbf16> to vector<16x128xbf16>
    %12 = vector.shape_cast %9 : vector<16x128xbf16> to vector<1x16x128xbf16>
    tpu.vector_store %arg5[%c0_7, %c0_8, %c0_9], %12 {strides = array<i32>} : memref<1x16x128xbf16, #tpu.memory_space<vmem>>, vector<1x16x128xbf16>,
    return
  }
  func.func @transform_0(%arg0: i32, %arg1: i32) -> (i32, i32, i32) {
    %c0_i32 = arith.constant 0 : i32
    %c0_i32_0 = arith.constant 0 : i32
    return %arg0, %arg1, %c0_i32 : i32, i32, i32
  }
  func.func @transform_1(%arg0: i32, %arg1: i32) -> (i32, i32) {
    %c0_i32 = arith.constant 0 : i32
    %c0_i32_0 = arith.constant 0 : i32
    %c0_i32_1 = arith.constant 0 : i32
    return %c0_i32, %c0_i32_0 : i32, i32
  }
  func.func @transform_2(%arg0: i32, %arg1: i32) -> (i32, i32) {
    %c0_i32 = arith.constant 0 : i32
    %c0_i32_0 = arith.constant 0 : i32
    %c0_i32_1 = arith.constant 0 : i32
    return %c0_i32, %c0_i32_0 : i32, i32
  }
  func.func @transform_3(%arg0: i32, %arg1: i32) -> (i32, i32, i32) {
    %c0_i32 = arith.constant 0 : i32
    %c0_i32_0 = arith.constant 0 : i32
    return %arg0, %arg1, %c0_i32 : i32, i32, i32
  }
}

</mosaic_0001>

<bundles_post_ra>
// kernel: _stem_forward.1
= control target key start
LH: loop header
LB: loop body
LE: loop exit
PB: predicated region body
PF: predicated region fallthrough
CT: control target
= control target key end

     0   :  { %s654_s12 = smov 0   ;;  %s656_s13 = smov 0   ;;  %s742_s0 = inlined_call_operand.vmem [shape: bf16[2,16,256], index: 0, kind: input, shape index: {}]   ;;  %s743_s1 = inlined_call_operand.vmem [shape: bf16[256,128], index: 1, kind: input, shape index: {}]   ;;  %s744_s2 = inlined_call_operand.vmem [shape: f32[1,128], index: 2, kind: input, shape index: {}]   ;;  %s745_s3 = inlined_call_operand.vmem [shape: bf16[2,16,128], index: 3, kind: output, shape index: {}]  }
   0x1   :  { %s658_s14 = smov 0  }
   0x2 LB: > { %s25_s15 = sadd.s32 1, %s628_s13  ;;  %p508_p0 = scmp.ge.s32.totalorder %s632_s14, 1  ;;  %s632_s14 = sphi %s658_s14, %s13_s14   ;;  %s628_s13 = sphi %s656_s13, %s747_s13   ;;  %s624_s12 = sphi %s654_s12, %s746_s12  }
   0x3   : > { %p27_p1 = scmp.ge.s32.totalorder %s25_s15, 2  ;;  %p159_p2 = scmp.lt.s32.totalorder %s632_s14, 3 }
   0x5   : > { %s749_s15 = smov (%p27_p1, %s25_s15), 0  ;;  %p160_p3 = pnand %p508_p0, %p159_p2 }
   0x6   : > { %v591_v0 = vld [vmem:[%s743_s1 + $0x40] sm:$0xff] (!%p160_p3)   ;;  %v593_v2 = vld [vmem:[%s743_s1 + $0x48] sm:$0xff] (!%p160_p3)   ;;  %p193_p4 = scmp.lt.s32.totalorder (!%p160_p3), %s624_s12, 1  ;;  %v595_v4 = vld [vmem:[%s743_s1 + $0x50] sm:$0xff] (!%p160_p3)  }
   0x7   : > { %163 = sbr.rel (%p160_p3) target bundleno = 263 (0x107), region = 32  ;;  %v592_v1 = vld [vmem:[%s743_s1] sm:$0xff] (!%p160_p3)   ;;  %545 = vmatprep.subr.bf16.mxu0 (!%p160_p3), %v591_v0  ;;  %v594_v3 = vld [vmem:[%s743_s1 + $0x8] sm:$0xff] (!%p160_p3)   ;;  %v596_v5 = vld [vmem:[%s743_s1 + $0x10] sm:$0xff] (!%p160_p3)  }
   0x8   : > { %546 = vmatpush3.bf16.msra.mxu0 (!%p160_p3), %v592_v1  ;;  %v597_v6 = vld [vmem:[%s743_s1 + $0x58] sm:$0xff] (!%p160_p3)   ;;  %v599_v8 = vld [vmem:[%s743_s1 + $0x60] sm:$0xff] (!%p160_p3)   ;;  %v601_v10 = vld [vmem:[%s743_s1 + $0x68] sm:$0xff] (!%p160_p3)  }
   0x9   : > { %547 = vmatprep.subr.bf16.mxu0 (!%p160_p3), %v593_v2  ;;  %v598_v7 = vld [vmem:[%s743_s1 + $0x18] sm:$0xff] (!%p160_p3)   ;;  %v600_v9 = vld [vmem:[%s743_s1 + $0x20] sm:$0xff] (!%p160_p3)   ;;  %v602_v12 = vld [vmem:[%s743_s1 + $0x28] sm:$0xff] (!%p160_p3)  }
   0xa   : > { %v603_v13 = vld [vmem:[%s743_s1 + $0x70] sm:$0xff] (!%p160_p3)   ;;  %v605_v15 = vld [vmem:[%s743_s1 + $0x78] sm:$0xff] (!%p160_p3)   ;;  %v513_v19 = vld [vmem:[%s744_s2] ss:$0 sm:$0xff] (!%p160_p3) }
   0xb   : > { %v604_v14 = vld [vmem:[%s743_s1 + $0x30] sm:$0xff] (!%p160_p3)   ;;  %v606_v16 = vld [vmem:[%s743_s1 + $0x38] sm:$0xff] (!%p160_p3)  }
   0xc   : > { %548 = vmatpush3.bf16.msra.mxu0 (!%p160_p3), %v594_v3 }
   0xd   : > { %549 = vmatprep.subr.bf16.mxu0 (!%p160_p3), %v595_v4 }
   0xe   : > { %s751_s12 = smov (!%p193_p4, %s624_s12), 1 }
   0xf   : > { %s536_s5 = sshll.u32 %s751_s12, 4  ;;  %s537_s4 = sshll.u32 %s751_s12, 3 }
  0x10   : > { %550 = vmatpush3.bf16.msra.mxu0 %v596_v5  ;;  %s201_s10 = scalar_lea.vmem %s742_s0, %s536_s5  ;;  %s211_s7 = scalar_lea.vmem %s745_s3, %s537_s4 }
  0x11   : > { %551 = vmatprep.subr.bf16.mxu0 %v597_v6  ;;  %v609_v11 = vld [vmem:[%s201_s10 + $0x4] ss:$8 sps:$4 sm:$0xff]   ;;  %v607_v17 = vld [vmem:[%s201_s10] ss:$8 sps:$4 sm:$0xff]  }
  0x12   : > { %393 = vmatprep.mubr.bf16.mxu0 %v609_v11 }
  0x14   : > { %552 = vmatpush3.bf16.msra.mxu0 %v598_v7 }
  0x15   : > { %553 = vmatprep.subr.bf16.mxu0 %v599_v8 }
  0x18   : > { %554 = vmatpush3.bf16.msra.mxu0 %v600_v9 }
  0x19   : > { %555 = vmatprep.subr.bf16.mxu0 %v601_v10 }
  0x1c   : > { %556 = vmatpush3.bf16.msra.mxu0 %v602_v12 }
  0x1d   : > { %557 = vmatprep.subr.bf16.mxu0 %v603_v13 }
  0x20   : > { %558 = vmatpush3.bf16.msra.mxu0 %v604_v14 }
  0x21   : > { %559 = vmatprep.subr.bf16.mxu0 %v605_v15 }
  0x24   : > { %560 = vmatpush3.bf16.msra.mxu0 %v606_v16 }
  0x27   : > { %394 = vmatmul.mubr.bf16.vlgmr.msra.gmra.mrb[0].mxu0 %v607_v17 }
  0xfa   : > { %v561_v18 = vpop.f32.mrb[0].mxu0 }
  0xfb   : > { %v562_v20 = vpop.f32.mrb[1].mxu0 }
  0xfc   : > { %v563_v21 = vadd.f32 %v562_v20, %v561_v18  ;;  %v564_v22 = vpop.f32.mrb[2].mxu0 }
  0xfd   : > { %v565_v23 = vpop.f32.mrb[3].mxu0 }
  0xfe   : > { %v396_v24 = vadd.f32 %v563_v21, %v513_v19  ;;  %v566_v25 = vadd.f32 %v565_v23, %v564_v22 }
 0x100   : > { %v399_v26 = vadd.f32 %v566_v25, %v513_v19  ;;  %v402_v27 = vmax.f32 %v396_v24, 0.0 }
 0x102   : > { %v403_v28 = vmax.f32 %v399_v26, 0.0 }
 0x104   : > { %v543_v29 = vpack.c.bf16 %v403_v28, %v402_v27 }
 0x106   : > { %544 = vst [vmem:[%s211_s7] sm:$0xff] %v543_v29  }
 0x107 PF: > { %s13_s14 = sadd.s32 1, %s632_s14   ;;  %s746_s12 = smov %s628_s13 }
 0x108   : > { %p10_p5 = scmp.ge.s32.totalorder %s13_s14, 4   ;;  %s747_s13 = smov %s749_s15 }
 0x10a   :  { %12 = sbr.rel (!%p10_p5) target bundleno = 2 (0x2), region = 62 }

</bundles_post_ra>
